<compile_context>
chip_gen: v6e
topology: v6e:2x2x1
jax: 0.10.0
libtpu: 0.0.40
codegen_flags: <defaults>
</compile_context>

<pallas_src>
import functools

import jax
import jax.numpy as jnp
from jax import lax
from jax.experimental import pallas as pl
from jax.experimental.pallas import tpu as pltpu


def _round_up(x, m):
    return ((x + m - 1) // m) * m


def _vmem_budget_cap():
    """Half of physical VMEM: 64 MiB on v5e/v6e, 32 MiB on v7x."""
    try:
        phys = int(getattr(pltpu.get_tpu_info(), "vmem_capacity_bytes", 64 << 20))
    except Exception:  # no TPU info available -> conservative (v7x-sized) cap
        phys = 64 << 20
    return max(16 << 20, min(phys // 2, 64 << 20))


def _focal_loss_kernel(logits_ref, targets_ref, out_ref, *, gamma, alpha,
                       ignore_index, n_rows):
    logits = logits_ref[...].astype(jnp.float32)          # (TILE_N, C) widened
    tgt = targets_ref[...]                                  # (TILE_N, 1) int32
    tn, c = logits.shape

    # Row validity: in-range row (handles the ragged tail of a partial boundary
    # block — no wrapper-side jnp.pad of logits) AND target != ignore_index.
    row_ids = pl.program_id(0) * tn + lax.broadcasted_iota(jnp.int32, (tn, 1), 0)
    valid = jnp.logical_and(row_ids < n_rows, tgt != ignore_index)  # (TILE_N,1)

    # Numerically stable log-softmax cross entropy per row.
    row_max = jnp.max(logits, axis=-1, keepdims=True)               # (TILE_N,1)
    shifted = logits - row_max                                       # (TILE_N,C)
    lse = jnp.log(jnp.sum(jnp.exp(shifted), axis=-1, keepdims=True))

    # Fused masked gather of the target logit (no (TILE_N, C) one-hot temp).
    class_ids = lax.broadcasted_iota(jnp.int32, (tn, c), 1)
    logp_target = jnp.sum(jnp.where(class_ids == tgt, shifted, 0.0),
                          axis=-1, keepdims=True) - lse

    ce = -logp_target                                                # (TILE_N,1)
    pt = jnp.exp(-ce)
    one_minus_pt = jnp.maximum(1.0 - pt, 0.0)                        # clamp noise

    # gamma is a static Python float -> specialize at trace time.
    if gamma == 1.0:
        w = one_minus_pt
    elif float(gamma).is_integer() and gamma >= 0.0:
        w = jnp.ones_like(one_minus_pt)
        for _ in range(int(gamma)):
            w = w * one_minus_pt
    else:
        # TODO(synk): forward-only; a guarded pow is needed if differentiated.
        w = one_minus_pt ** gamma

    focal = alpha * w * ce                                           # (TILE_N,1)

    # select (not multiply): garbage logits in masked tail rows can't inject NaN.
    total = jnp.sum(jnp.where(valid, focal, 0.0))                    # scalar
    count = jnp.sum(valid.astype(jnp.float32))                       # scalar

    # Lane-dense (1, 8, 128) partial-result slab: sublane 0 = partial focal sum,
    # sublane 1 = valid count, rest zeros.
    sub = lax.broadcasted_iota(jnp.int32, (1, 8, 128), 1)
    out_ref[...] = jnp.where(sub == 0, total,
                             jnp.where(sub == 1, count, 0.0))


def _focal_loss_ref(inputs, targets, *, gamma=1.0, alpha=0.4, ignore_index=-1):
    """Pure-JAX reference mirroring the PyTorch module (also the small-C path)."""
    valid = targets != ignore_index
    logp = jax.nn.log_softmax(inputs.astype(jnp.float32), axis=-1)
    safe_t = jnp.where(valid, targets, 0)
    ce = -jnp.take_along_axis(logp, safe_t[:, None], axis=-1)[:, 0]
    pt = jnp.exp(-ce)
    focal = alpha * (1.0 - pt) ** gamma * ce
    cnt = jnp.sum(valid.astype(jnp.float32))
    return jnp.where(cnt > 0,
                     jnp.sum(jnp.where(valid, focal, 0.0)) / jnp.maximum(cnt, 1.0),
                     0.0)


def focal_loss(inputs, targets, *, gamma=1.0, alpha=0.4, ignore_index=-1,
               target_tile_bytes=4 << 20, block_rows=None, small_c_fallback=True):
    """inputs: (N, C) float logits (native dtype); targets: (N,) int labels."""
    n, c = inputs.shape
    targets = targets.astype(jnp.int32)

    # Small-C path: with C << 128 the kernel wastes most of every lane; plain
    # XLA is strictly better there.  (Lane-packing TODO at top of file.)
    if small_c_fallback and c <= 32:
        return _focal_loss_ref(inputs, targets, gamma=gamma, alpha=alpha,
                               ignore_index=ignore_index)

    itemsize = jnp.dtype(inputs.dtype).itemsize
    c_pad = _round_up(c, 128)
    # Sublane-packing multiple: 8 for f32, 16 for bf16, 32 for int8/fp8.
    sub_mult = max(8, 32 // max(1, itemsize))

    vmem_budget = _vmem_budget_cap()

    # VMEM charged per tile row:
    #   2x double-buffered streamed logits (native dtype, lane-padded)
    # + ~5 f32 (row, c_pad) temporaries in the kernel body
    # + 2x double-buffered lane-padded int32 targets.
    per_row_bytes = c_pad * (2 * itemsize + 5 * 4) + 2 * 128 * 4
    max_rows_vmem = max(
        sub_mult,
        ((vmem_budget - (4 << 20)) // per_row_bytes) // sub_mult * sub_mult)

    if block_rows is None:
        # ~target_tile_bytes of streamed logits per grid step: amortizes the
        # ~0.35us/step overhead at small C, shrinks automatically at large C.
        tile_n = max(sub_mult,
                     (target_tile_bytes // (c_pad * itemsize)) // sub_mult * sub_mult)
    else:
        tile_n = _round_up(int(block_rows), sub_mult)
    tile_n = int(max(sub_mult, min(tile_n, max_rows_vmem, _round_up(n, sub_mult))))

    num_blocks = pl.cdiv(n, tile_n)
    targets2d = targets.reshape(n, 1)

    kernel = functools.partial(
        _focal_loss_kernel,
        gamma=float(gamma),
        alpha=float(alpha),
        ignore_index=int(ignore_index),
        n_rows=int(n),
    )

    # Real working set (double-buffered inputs + f32 temporaries + slack).
    in_bytes = 2 * tile_n * c_pad * itemsize
    tmp_bytes = 5 * tile_n * c_pad * 4
    tgt_bytes = 2 * tile_n * 128 * 4
    out_bytes = 2 * 8 * 128 * 4
    vmem_limit = int(max(16 << 20,
                         min(vmem_budget,
                             in_bytes + tmp_bytes + tgt_bytes + out_bytes + (2 << 20))))

    # TODO(synk): on v5e, if profiling shows exposed DMA at moderate tiles, add
    # pipeline_mode=pl.Buffered(3) on the logits BlockSpec.
    partials = pl.pallas_call(
        kernel,
        out_shape=jax.ShapeDtypeStruct((num_blocks, 8, 128), jnp.float32),
        grid=(num_blocks,),
        in_specs=[
            pl.BlockSpec((tile_n, c), lambda i: (i, 0)),   # logits row tile
            pl.BlockSpec((tile_n, 1), lambda i: (i, 0)),   # targets row tile
        ],
        out_specs=pl.BlockSpec((1, 8, 128), lambda i: (i, 0, 0)),
        compiler_params=pltpu.CompilerParams(
            dimension_semantics=("parallel",),
            vmem_limit_bytes=vmem_limit,
        ),
    )(inputs, targets2d)

    total = jnp.sum(partials[:, 0, 0])
    count = jnp.sum(partials[:, 1, 0])
    # NaN-free finalize: matches the PyTorch early-out (0.0 if no valid rows).
    return jnp.where(count > 0.0, total / jnp.maximum(count, 1.0), 0.0)


if __name__ == "__main__":
    key = jax.random.PRNGKey(0)
    k1, k2, k3, k4, k5 = jax.random.split(key, 5)

    # Case 1: small C forced through the Pallas kernel; block_rows=8 gives a
    # multi-block grid with a ragged tail (exercises in-kernel tail masking,
    # no logits padding).
    N1, C1 = 20, 8
    logits1 = jax.random.normal(k1, (N1, C1), dtype=jnp.float32)
    targets1 = jax.random.randint(k2, (N1,), 0, C1, dtype=jnp.int32)
    ignore = jax.random.bernoulli(k3, p=0.25, shape=(N1,))
    targets1 = jnp.where(ignore, -1, targets1)
    out1 = jax.block_until_ready(
        focal_loss(logits1, targets1, small_c_fallback=False, block_rows=8))
    ref1 = _focal_loss_ref(logits1, targets1)
    assert jnp.allclose(out1, ref1, atol=1e-5, rtol=1e-5), (out1, ref1)

    # Case 2: C > 128 (not a multiple of 128), default budget-driven tiling.
    N2, C2 = 64, 160
    logits2 = jax.random.normal(k4, (N2, C2), dtype=jnp.float32)
    targets2 = jax.random.randint(k5, (N2,), 0, C2, dtype=jnp.int32)
    targets2 = targets2.at[::7].set(-1)
    out2 = jax.block_until_ready(focal_loss(logits2, targets2))
    ref2 = _focal_loss_ref(logits2, targets2)
    assert jnp.allclose(out2, ref2, atol=1e-5, rtol=1e-5), (out2, ref2)

    # Case 3: all rows ignored -> exactly 0.0 (matches the PyTorch early-out).
    all_ignored = jnp.full((N1,), -1, dtype=jnp.int32)
    out3 = jax.block_until_ready(
        focal_loss(logits1, all_ignored, small_c_fallback=False))
    assert jnp.allclose(out3, 0.0), out3

    # Case 4: default small-C fallback path (pure XLA) for C <= 32.
    out4 = jax.block_until_ready(focal_loss(logits1, targets1))
    assert jnp.allclose(out4, ref1, atol=1e-5, rtol=1e-5), (out4, ref1)

    print("KERNEL_OK")
</pallas_src>

<mosaic_0001>
module attributes {stable_mosaic.version = 11 : i64} {
  func.func @_focal_loss_kernel(%arg0: i32, %arg1: memref<8x8xf32, #tpu.memory_space<vmem>>, %arg2: memref<8x1xi32, #tpu.memory_space<vmem>>, %arg3: memref<1x8x128xf32, #tpu.memory_space<vmem>>) attributes {dimension_semantics = [#tpu.dimension_semantics<parallel>], iteration_bounds = array<i64: 3>, scalar_prefetch = 0 : i64, scratch_operands = 0 : i64, tpu.core_type = #tpu.core_type<tc>, window_params = [{transform_indices = @transform_0, window_bounds = array<i64: 8, 8>}, {transform_indices = @transform_1, window_bounds = array<i64: 8, 1>}, {transform_indices = @transform_2, window_bounds = array<i64: 1, 8, 128>}]} {
    %c0 = arith.constant 0 : index
    %c0_0 = arith.constant 0 : index
    %0 = vector.load %arg1[%c0, %c0_0] : memref<8x8xf32, #tpu.memory_space<vmem>>, vector<8x8xf32>
    %c0_1 = arith.constant 0 : index
    %c0_2 = arith.constant 0 : index
    %1 = vector.load %arg2[%c0_1, %c0_2] : memref<8x1xi32, #tpu.memory_space<vmem>>, vector<8x1xi32>
    %c8_i32 = arith.constant 8 : i32
    %2 = arith.muli %arg0, %c8_i32 : i32
    %3 = tpu.iota {dimensions = array<i32: 0>} : vector<8x1xi32>
    %4 = vector.broadcast %2 : i32 to vector<8x1xi32>
    %5 = arith.addi %4, %3 : vector<8x1xi32>
    %c20_i32 = arith.constant 20 : i32
    %6 = vector.broadcast %c20_i32 : i32 to vector<8x1xi32>
    %7 = arith.cmpi slt, %5, %6 : vector<8x1xi32>
    %c-1_i32 = arith.constant -1 : i32
    %8 = vector.broadcast %c-1_i32 : i32 to vector<8x1xi32>
    %9 = arith.cmpi ne, %1, %8 : vector<8x1xi32>
    %10 = arith.andi %7, %9 : vector<8x1xi1>
    %cst = arith.constant dense<0xFF800000> : vector<8xf32>
    %11 = vector.multi_reduction <maximumf>, %0, %cst [1] : vector<8x8xf32> to vector<8xf32>
    %12 = vector.shape_cast %11 : vector<8xf32> to vector<8x1xf32>
    %13 = vector.broadcast %12 : vector<8x1xf32> to vector<8x8xf32>
    %14 = arith.subf %0, %13 : vector<8x8xf32>
    %15 = math.exp %14 : vector<8x8xf32>
    %cst_3 = arith.constant dense<0.000000e+00> : vector<8xf32>
    %16 = vector.multi_reduction <add>, %15, %cst_3 [1] : vector<8x8xf32> to vector<8xf32>
    %17 = vector.shape_cast %16 : vector<8xf32> to vector<8x1xf32>
    %18 = math.log %17 : vector<8x1xf32>
    %19 = tpu.iota {dimensions = array<i32: 1>} : vector<8x8xi32>
    %20 = vector.broadcast %1 : vector<8x1xi32> to vector<8x8xi32>
    %21 = arith.cmpi eq, %19, %20 : vector<8x8xi32>
    %cst_4 = arith.constant 0.000000e+00 : f32
    %22 = vector.broadcast %cst_4 : f32 to vector<8x8xf32>
    %23 = arith.select %21, %14, %22 : vector<8x8xi1>, vector<8x8xf32>
    %cst_5 = arith.constant dense<0.000000e+00> : vector<8xf32>
    %24 = vector.multi_reduction <add>, %23, %cst_5 [1] : vector<8x8xf32> to vector<8xf32>
    %25 = vector.shape_cast %24 : vector<8xf32> to vector<8x1xf32>
    %26 = arith.subf %25, %18 : vector<8x1xf32>
    %cst_6 = arith.constant 0.000000e+00 : f32
    %27 = vector.broadcast %cst_6 : f32 to vector<8x1xf32>
    %28 = arith.subf %27, %26 : vector<8x1xf32>
    %cst_7 = arith.constant 0.000000e+00 : f32
    %29 = vector.broadcast %cst_7 : f32 to vector<8x1xf32>
    %30 = arith.subf %29, %28 : vector<8x1xf32>
    %31 = math.exp %30 : vector<8x1xf32>
    %cst_8 = arith.constant 1.000000e+00 : f32
    %32 = vector.broadcast %cst_8 : f32 to vector<8x1xf32>
    %33 = arith.subf %32, %31 : vector<8x1xf32>
    %cst_9 = arith.constant 0.000000e+00 : f32
    %34 = vector.broadcast %cst_9 : f32 to vector<8x1xf32>
    %35 = arith.maximumf %33, %34 : vector<8x1xf32>
    %cst_10 = arith.constant 4.000000e-01 : f32
    %36 = vector.broadcast %cst_10 : f32 to vector<8x1xf32>
    %37 = arith.mulf %36, %35 : vector<8x1xf32>
    %38 = arith.mulf %37, %28 : vector<8x1xf32>
    %cst_11 = arith.constant 0.000000e+00 : f32
    %39 = vector.broadcast %cst_11 : f32 to vector<8x1xf32>
    %40 = arith.select %10, %38, %39 : vector<8x1xi1>, vector<8x1xf32>
    %41 = vector.shape_cast %40 : vector<8x1xf32> to vector<1x8x1xf32>
    %cst_12 = arith.constant dense<0.000000e+00> : vector<1xf32>
    %42 = vector.multi_reduction <add>, %41, %cst_12 [1, 2] : vector<1x8x1xf32> to vector<1xf32>
    %43 = vector.shape_cast %42 : vector<1xf32> to vector<1x1x1xf32>
    %44 = vector.extract %43[0, 0, 0] : f32 from vector<1x1x1xf32>
    %45 = arith.extui %10 : vector<8x1xi1> to vector<8x1xi32>
    %46 = arith.sitofp %45 : vector<8x1xi32> to vector<8x1xf32>
    %47 = vector.shape_cast %46 : vector<8x1xf32> to vector<1x8x1xf32>
    %cst_13 = arith.constant dense<0.000000e+00> : vector<1xf32>
    %48 = vector.multi_reduction <add>, %47, %cst_13 [1, 2] : vector<1x8x1xf32> to vector<1xf32>
    %49 = vector.shape_cast %48 : vector<1xf32> to vector<1x1x1xf32>
    %50 = vector.extract %49[0, 0, 0] : f32 from vector<1x1x1xf32>
    %51 = tpu.iota {dimensions = array<i32: 1>} : vector<1x8x128xi32>
    %c0_i32 = arith.constant 0 : i32
    %52 = vector.broadcast %c0_i32 : i32 to vector<1x8x128xi32>
    %53 = arith.cmpi eq, %51, %52 : vector<1x8x128xi32>
    %c1_i32 = arith.constant 1 : i32
    %54 = vector.broadcast %c1_i32 : i32 to vector<1x8x128xi32>
    %55 = arith.cmpi eq, %51, %54 : vector<1x8x128xi32>
    %cst_14 = arith.constant 0.000000e+00 : f32
    %56 = vector.broadcast %50 : f32 to vector<1x8x128xf32>
    %57 = vector.broadcast %cst_14 : f32 to vector<1x8x128xf32>
    %58 = arith.select %55, %56, %57 : vector<1x8x128xi1>, vector<1x8x128xf32>
    %59 = vector.broadcast %44 : f32 to vector<1x8x128xf32>
    %60 = arith.select %53, %59, %58 : vector<1x8x128xi1>, vector<1x8x128xf32>
    %c0_15 = arith.constant 0 : index
    %c0_16 = arith.constant 0 : index
    %c0_17 = arith.constant 0 : index
    %61 = vector.load %arg3[%c0_15, %c0_16, %c0_17] : memref<1x8x128xf32, #tpu.memory_space<vmem>>, vector<1x8x128xf32>
    tpu.vector_store %arg3[%c0_15, %c0_16, %c0_17], %60 {strides = array<i32>} : memref<1x8x128xf32, #tpu.memory_space<vmem>>, vector<1x8x128xf32>,
    return
  }
  func.func @transform_0(%arg0: i32) -> (i32, i32) {
    %c0_i32 = arith.constant 0 : i32
    %c0_i32_0 = arith.constant 0 : i32
    return %arg0, %c0_i32 : i32, i32
  }
  func.func @transform_1(%arg0: i32) -> (i32, i32) {
    %c0_i32 = arith.constant 0 : i32
    %c0_i32_0 = arith.constant 0 : i32
    return %arg0, %c0_i32 : i32, i32
  }
  func.func @transform_2(%arg0: i32) -> (i32, i32, i32) {
    %c0_i32 = arith.constant 0 : i32
    %c0_i32_0 = arith.constant 0 : i32
    %c0_i32_1 = arith.constant 0 : i32
    return %arg0, %c0_i32, %c0_i32_0 : i32, i32, i32
  }
}

</mosaic_0001>

<bundles_post_ra>
// kernel: tpu_custom_call.1
= control target key start
LH: loop header
LB: loop body
LE: loop exit
PB: predicated region body
PF: predicated region fallthrough
CT: control target
= control target key end

     0   :  { %7 = vsyncpa [#allocation3], 0  ;;  %s558_s0 = inlined_call_operand.vmem [shape: f32[20,8], index: 0, kind: input, shape index: {}]   ;;  %s559_s1 = inlined_call_operand.vmem [shape: s32[20,1], index: 1, kind: input, shape index: {}]   ;;  %s560_s2 = inlined_call_operand.hbm [shape: f32[3,8,128], index: 2, kind: output, shape index: {}]  }
   0x1   :  { %9 = vsyncpa [#allocation3 + $0x1], 0  ;;  %s458_s9 = smov 0   ;;  %s460_s10 = smov 0  }
   0x2   :  { %s462_s11 = smov 0   ;;  %s464_s12 = smov 0  }
   0x3 LB: > { %s479_s13 = sadd.s32 4294967295, %s438_s12   ;;  %s313_s14 = sadd.s32 4294967294, %s438_s12   ;;  %s438_s12 = sphi %s464_s12, %s566_s12   ;;  %s434_s11 = sphi %s462_s11, %s565_s11   ;;  %s430_s10 = sphi %s460_s10, %s564_s10   ;;  %s426_s9 = sphi %s458_s9, %s563_s9  }
   0x4   : > { %s483_s15 = sadd.s32 1, %s438_s12   ;;  %s74_s16 = sadd.s32 1, %s434_s11 }
   0x5   : > { %s71_s17 = ssub.s32 %s438_s12, %s483_s15  ;;  %p84_p0 = scmp.ne.s32.totalorder %s434_s11, %s430_s10 }
   0x6   : > { %p72_p1 = scmp.eq.s32.totalorder %s71_s17, 0  ;;  %p85_p2 = scmp.eq.s32.totalorder %s479_s13, 2 }
   0x7   : > { %p90_p3 = scmp.ne.s32.totalorder %s430_s10, %s426_s9  ;;  %p91_p4 = scmp.eq.s32.totalorder %s313_s14, 2 }
   0x8   : > { %s494_s18 = scalar_select %p72_p1, %s434_s11, %s74_s16  }
   0x9   : > { %p496_p5 = por %p85_p2, %p84_p0  ;;  %p500_p6 = por %p91_p4, %p90_p3 }
   0xa   : > { %p316_p7 = scmp.ge.s32.totalorder %s438_s12, 1  ;;  %p123_p8 = scmp.lt.s32.totalorder %s438_s12, 4 }
   0xc   : > { %p124_p9 = pnand %p316_p7, %p123_p8 }
   0xd   : > { %p148_p10 = scmp.lt.s32.totalorder (!%p124_p9), %s479_s13, 2  ;;  %s320_s29 = sshll.u32 (!%p124_p9), %s479_s13, 3 }
   0xe   : > { %127 = sbr.rel (%p124_p9) target bundleno = 588 (0x24c), region = 28  ;;  %s145_s30 = sand.u32 (!%p124_p9), 1, %s430_s10  }
   0xf   : > { %s317_s3 = sshll.u32 (!%p124_p9), %s145_s30, 3  ;;  %s323_s4 = sshll.u32 (!%p124_p9), %s479_s13, 7 }
  0x10   : > { %s147_s6 = scalar_lea.vmem (!%p124_p9), [#allocation2], %s317_s3  ;;  %s523_s17 = scalar_lea.hbm (!%p124_p9), %s560_s2, %s323_s4 }
  0x11   : > { %s242_s7 = sshll.u32 (!%p124_p9), %s147_s6, 4  ;;  %s243_s7 = int_to_ptr.vmem [resolvable:$true] %s242_s7 }
  0x13   : > { %v440_v0 = vmov 0   ;;  %s149_s21 = scalar_select %p148_p10, %s479_s13, 2  ;;  %vm166_vm0 = vcmask 64512   ;;  %v159_v7 = vlaneseq  ;;  %v161_v23 = vstv %s320_s29 }
  0x14   : > { %371 = vset.pattern.permute.xlu0 %v440_v0  ;;  %vm198_vm5 = vcmask 7168   ;;  %v441_v31 = vmov 0.0   ;;  %s378_s13 = scalar_lea.vmem %s243_s7, 128 }
  0x15   : > { %s318_s22 = sshll.u32 %s149_s21, 3  ;;  %v179_v8 = vand.u32 127, %v159_v7  ;;  %v160_v22 = vshrl.u32 %v159_v7, 7  ;;  %s229_s21 = scalar_lea.sflag [#allocation3], %s145_s30 }
  0x16   : > { %s151_s25 = scalar_lea.vmem %s558_s0, %s318_s22  ;;  %s155_s28 = scalar_lea.vmem %s559_s1, %s318_s22 }
  0x17   : > { %v156_v1 = vld [vmem:[%s151_s25] sm:$0xff]  ;;  %v162_v24 = vadd.s32 %v161_v23, %v160_v22  ;;  %vm222_vm6 = vcmp.eq.s32.totalorder %v160_v22, 1  ;;  %vm221_vm7 = vcmp.eq.s32.totalorder %v160_v22, 0  ;;  %p379_p11 = scmp.ne.s32.totalorder %s243_s7, %s378_s13  ;;  %s442_s22 = smov [#allocation2]  }
  0x18   : > { %v167_v2 = vsel %vm166_vm0, %v156_v1, -inf  ;;  %v157_v3 = vld [vmem:[%s155_s28] sm:$0xff]  ;;  %s382_s23 = sshll.u32 %s442_s22, 4  ;;  %s383_s23 = int_to_ptr.vmem [resolvable:$false] %s382_s23 }
  0x19   : > { %168 = vmax.xlane.f32.xlu0 %v167_v2  ;;  %vm164_vm2 = vcmp.ne.s32.totalorder %v157_v3, 4294967295  ;;  %vm163_vm3 = vcmp.lt.s32.totalorder %v162_v24, 20  ;;  %p380_p12 = pnand %p379_p11, %p496_p5  ;;  %s384_s24 = scalar_lea.vmem %s383_s23, 256 }
  0x1a   : > { %vm165_vm4 = vmand %vm163_vm3, %vm164_vm2  ;;  %p385_p0 = scmp.lt.s32.totalorder %s243_s7, %s383_s23  ;;  %p386_p1 = scmp.lt.s32.totalorder %s384_s24, %s378_s13 }
  0x1b   : > { %v321_v32 = vsel %vm165_vm4, 1.0, %v441_v31  ;;  %p381_p13 = pneg %p380_p12 }
  0x1c   : > { %v211_v34 = vsel %vm198_vm5, %v321_v32, 0.0  ;;  %p387_p2 = por %p386_p1, %p385_p0 }
  0x1e   : > { %p388_p3 = pnand %p387_p2, %p381_p13 }
  0x2f   : > { %181 = vperm.xlu0 %371, %v157_v3  }
  0xa2   : > { %v169_v4 = vpop.xlane.xlu0 %168 }
  0xa3   : > { %v170_v5 = vsub.f32 %v156_v1, %v169_v4 }
  0xa5   : > { %v171_v6 = vmul.f32 1.442695, %v170_v5 }
  0xa7   : > { %372 = vpow2.f32 %v171_v6 }
  0xaa   : > { %v182_v9 = vpop.permute.xlu0 %181 }
  0xab   : > { %vm183_vm1 = vcmp.eq.s32.totalorder %v179_v8, %v182_v9 }
  0xac   : > { %v184_v12 = vsel %vm183_vm1, %v170_v5, 0.0 }
  0xad   : > { %v185_v13 = vsel %vm166_vm0, %v184_v12, 0.0 }
  0xb4   : > { %v373_v10 = vpop.eup %372 }
  0xb5   : > { %v173_v11 = vsel %vm166_vm0, %v373_v10, 0.0 }
  0xb6   : > { %174 = vadd.xlane.f32.xlu1 %v173_v11 }
  0xba   : > { %186 = vadd.xlane.f32.xlu1 %v185_v13 }
 0x13f   : > { %v175_v14 = vpop.xlane.xlu1 %174 }
 0x140   : > { %374 = vlog2.f32 %v175_v14 }
 0x143   : > { %v187_v17 = vpop.xlane.xlu1 %186 }
 0x14d   : > { %v375_v15 = vpop.eup %374 }
 0x14e   : > { %v177_v16 = vmul.f32 0.6931472, %v375_v15 }
 0x150   : > { %v188_v18 = vsub.f32 %v187_v17, %v177_v16 }
 0x152   : > { %v189_v19 = vsub.f32 0.0, %v188_v18 }
 0x154   : > { %v190_v20 = vsub.f32 0.0, %v189_v19 }
 0x156   : > { %v191_v21 = vmul.f32 1.442695, %v190_v20 }
 0x158   : > { %376 = vpow2.f32 %v191_v21 }
 0x165   : > { %v377_v25 = vpop.eup %376 }
 0x166   : > { %v193_v26 = vsub.f32 1.0, %v377_v25 }
 0x168   : > { %v194_v27 = vmax.f32 %v193_v26, 0.0 }
 0x16a   : > { %v195_v28 = vmul.f32 0.4, %v194_v27 }
 0x16c   : > { %v196_v29 = vmul.f32 %v195_v28, %v189_v19 }
 0x16e   : > { %v197_v30 = vsel %vm165_vm4, %v196_v29, 0.0 }
 0x16f   : > { %v199_v33 = vsel %vm198_vm5, %v197_v30, 0.0 }
 0x170   : > { %200 = vadd.xlane.f32.xlu1 %v199_v33 }
 0x174   : > { %212 = vadd.xlane.f32.xlu1 %v211_v34 }
 0x1f9   : > { %v201_v35 = vpop.xlane.xlu1 %200 }
 0x1fa   : > { %v202_v36 = vrot.slane %v201_v35, 4 }
 0x1fc   : > { %v203_v37 = vadd.f32 %v202_v36, %v201_v35 }
 0x1fd   : > { %v213_v38 = vpop.xlane.xlu1 %212 }
 0x1fe   : > { %v204_v39 = vrot.slane %v203_v37, 2  ;;  %v214_v40 = vrot.slane %v213_v38, 4 }
 0x200   : > { %v215_v41 = vadd.f32 %v214_v40, %v213_v38  ;;  %v205_v42 = vadd.f32 %v204_v39, %v203_v37 }
 0x202   : > { %v216_v43 = vrot.slane %v215_v41, 2  ;;  %v206_v44 = vrot.slane %v205_v42, 1 }
 0x204   : > { %v217_v45 = vadd.f32 %v216_v43, %v215_v41  ;;  %v207_v46 = vadd.f32 %v206_v44, %v205_v42 }
 0x206   : > { %326 = vpush %v207_v46  ;;  %v218_v47 = vrot.slane %v217_v45, 1 }
 0x208   : > { %v219_v48 = vadd.f32 %v218_v47, %v217_v45 }
 0x20a   : > { %328 = vpush %v219_v48 }
 0x237   : > { %s327_s5 = spop %326 }
 0x238   : > { %v225_v50 = vstv %s327_s5 }
 0x23b   : > { %s329_s8 = spop %328 }
 0x23c   : > { %v223_v49 = vstv %s329_s8 }
 0x23d   : > { %v224_v51 = vsel %vm222_vm6, %v223_v49, 0.0 }
 0x23e   : > { %v226_v52 = vsel %vm221_vm7, %v225_v50, %v224_v51 }
 0x23f   : > { %227 = vst [vmem:[%s147_s6] sm:$0xff] %v226_v52 }
 0x240   : > { %391 = shalt.err (!%p388_p3)
}
 0x241   : > { %s392_s25 = scalar_lea.hbm %s523_s17, 128  ;;  %s396_s28 = scalar_lea.hbm %s560_s2, 384 }
 0x242   : > { %p393_p4 = scmp.ne.s32.totalorder %s523_s17, %s392_s25  ;;  %p397_p9 = scmp.lt.s32.totalorder %s523_s17, %s560_s2 }
 0x243   : > { %p398_p10 = scmp.lt.s32.totalorder %s396_s28, %s392_s25 }
 0x244   : > { %p394_p7 = pnand %p393_p4, %p496_p5 }
 0x245   : > { %p399_p11 = por %p398_p10, %p397_p9 }
 0x246   : > { %p395_p8 = pneg %p394_p7 }
 0x248   : > { %p400_p12 = pnand %p399_p11, %p395_p8 }
 0x24a   : > { %403 = shalt.err (!%p400_p12)
}
 0x24b   : > { %330 = dma.vmem_to_hbm [thread:$0]  (%p496_p5), %s243_s7, 128, %s523_s17, %s229_s21  }
 0x24c PF: > { %p336_p13 = scmp.ge.s32.totalorder %s438_s12, 2  ;;  %s254_s3 = sand.u32 1, %s426_s9  }
 0x24d   : > { %s255_s4 = scalar_lea.sflag [#allocation3], %s254_s3 }
 0x24e   : > { %p333_p0 = pnand %p336_p13, %p500_p6 }
 0x250   : > { %p334_p1 = pneg %p333_p0 }
 0x252   : > { %421 = dma.done.wait (%p334_p1), %s255_s4, 128  }
 0x253   : > { %423 = vsyncadd (%p334_p1), %s255_s4, 4294967168  ;;  %p12_p2 = scmp.ge.s32.totalorder %s483_s15, 5   ;;  %s563_s9 = smov %s430_s10 }
 0x254   : > { %s564_s10 = smov %s434_s11  ;;  %s565_s11 = smov %s494_s18 }
 0x255   : > { %s566_s12 = smov %s483_s15  ;;  %14 = sbr.rel (!%p12_p2) target bundleno = 3 (0x3), region = 66 }
 0x25a   :  { %260 = vsyncpa [#allocation3], 1 }
 0x25b   :  { %262 = vsyncpa [#allocation3 + $0x1], 1 }

</bundles_post_ra>
